<compile_context>
chip_gen: v5e
topology: v5e:2x2
jax: 0.10.0
libtpu: 0.0.40
codegen_flags: <defaults>
</compile_context>

<pallas_src>
import functools

import numpy as np
import jax
import jax.numpy as jnp
from jax import lax
from jax.experimental import pallas as pl
from jax.experimental.pallas import tpu as pltpu


def _ntxent_kernel(q_ref, kt_ref, *rest, inv_temp, batch_size, block_rows,
                   fast_partner):
    """One row-tile of the NT-Xent loss.

    q_ref:       (TM, D)   row tile of the (pre-normalized) representations
    kt_ref:      (D, N)    pre-normalized, pre-transposed keys (resident)
    partner_ref: (TM, D)   partner row tile (only when fast_partner)
    loss_ref:    (TM, 128) per-row loss, replicated across lanes (lane-dense)
    """
    if fast_partner:
        partner_ref, loss_ref = rest
    else:
        (loss_ref,) = rest

    row0 = pl.multiple_of(pl.program_id(0) * block_rows, block_rows)
    q = q_ref[...]

    # (TM, N) similarity on the MXU: canonical (TM, D) x (D, N), operands in
    # the wrapper-chosen matmul dtype (bf16 fast path on v6e/v7x), f32
    # accumulation; the 1/T scale fused as a single multiply.
    sim = lax.dot_general(
        q, kt_ref[...],
        dimension_numbers=(((1,), (0,)), ((), ())),
        preferred_element_type=jnp.float32,
    ) * jnp.float32(inv_temp)

    # Exclude the self-similarity from the denominator: one col iota + one
    # compare + one select (no row iota / partner iota full-width temporaries).
    col = lax.broadcasted_iota(jnp.int32, sim.shape, 1)
    rowv = row0 + lax.broadcasted_iota(jnp.int32, (block_rows, 1), 0)
    logits = jnp.where(col == rowv, jnp.float32(-1e30), sim)

    if fast_partner:
        # Positive logit via a direct O(TM*D) row-dot against the partner tile.
        p = partner_ref[...]
        pos = jnp.sum(q.astype(jnp.float32) * p.astype(jnp.float32),
                      axis=-1, keepdims=True) * jnp.float32(inv_temp)
    else:
        # Fallback (batch % block_rows != 0): pick the partner column from sim.
        partner_col = jnp.where(rowv < batch_size, rowv + batch_size,
                                rowv - batch_size)
        pos = jnp.sum(jnp.where(col == partner_col, sim, jnp.float32(0.0)),
                      axis=-1, keepdims=True)

    # Row-wise numerically-stable logsumexp over the valid logits.
    m = jnp.max(logits, axis=-1, keepdims=True)
    lse = m + jnp.log(jnp.sum(jnp.exp(logits - m), axis=-1, keepdims=True))

    loss = lse - pos                                             # (TM, 1)
    # Lane-dense, unmasked store (replicate across the 128 lanes).
    loss_ref[...] = jnp.broadcast_to(loss, loss_ref.shape).astype(loss_ref.dtype)


def ntxent_loss(zis, zjs, temperature, use_cosine_similarity=True,
                block_rows=None, matmul_dtype=None):
    """JAX/Pallas equivalent of NTXentLoss(...).forward(zis, zjs, ...)."""
    batch_size, d = zis.shape
    assert zjs.shape == (batch_size, d)
    n = 2 * batch_size
    # Matches torch.cat([zjs, zis], dim=0).
    reps = jnp.concatenate([zjs, zis], axis=0)

    # --- Hoisted, one-shot preprocessing (normalization + transpose). ---
    if use_cosine_similarity:
        r32 = reps.astype(jnp.float32)
        inv_norm = lax.rsqrt(
            jnp.maximum(jnp.sum(r32 * r32, axis=-1, keepdims=True),
                        jnp.float32(1e-16)))
        reps_n = r32 * inv_norm
    else:
        reps_n = reps.astype(jnp.float32)
    if matmul_dtype is None:
        matmul_dtype = reps.dtype            # caller's dtype (bf16 -> fast MXU)
    reps_n = reps_n.astype(matmul_dtype)
    kt = reps_n.T                            # (D, N), lane-dense MXU RHS

    # --- Row-tile size (multiple of 8; pad the query rows for odd N). ---
    if block_rows is None:
        block_rows = 256                     # fills the 256x256 MXU on v6e/v7x
    block_rows = max(8, min(int(block_rows), n))
    block_rows = (block_rows // 8) * 8
    num_tiles = pl.cdiv(n, block_rows)
    n_pad = num_tiles * block_rows

    fast_partner = (batch_size % block_rows == 0)   # implies n_pad == n

    q_in = reps_n
    if n_pad != n:
        q_in = jnp.pad(reps_n, ((0, n_pad - n), (0, 0)))

    # --- VMEM budget: resident keys + double-buffered tiles + (TM, N) f32
    #     softmax working set (sim/logits/exp/iota) — clamped to physical. ---
    itemsize = jnp.dtype(matmul_dtype).itemsize
    est_bytes = (2 * d * n * itemsize                 # resident (D, N) keys
                 + 2 * block_rows * d * itemsize      # query tile
                 + (2 * block_rows * d * itemsize if fast_partner else 0)
                 + 2 * block_rows * 128 * 4           # output tile
                 + 6 * block_rows * n * 4)            # softmax intermediates
    est_bytes = int(est_bytes * 1.25)
    try:
        phys = int(getattr(pltpu.get_tpu_info(), "vmem_capacity_bytes",
                           64 << 20))
    except Exception:
        phys = 64 << 20
    vmem_limit = int(min(max(est_bytes, 4 << 20), int(phys * 0.85)))

    kernel = functools.partial(
        _ntxent_kernel,
        inv_temp=1.0 / float(temperature),
        batch_size=batch_size,
        block_rows=block_rows,
        fast_partner=fast_partner,
    )

    in_specs = [
        pl.BlockSpec((block_rows, d), lambda i: (i, 0)),   # query rows
        pl.BlockSpec((d, n), lambda i: (0, 0)),            # resident keys
    ]
    inputs = [q_in, kt]
    if fast_partner:
        shift = batch_size // block_rows
        in_specs.append(
            pl.BlockSpec((block_rows, d),
                         lambda i: ((i + shift) % num_tiles, 0)))
        inputs.append(reps_n)

    cost = pl.CostEstimate(
        flops=2 * n_pad * n * d,
        transcendentals=n_pad * n,
        bytes_accessed=int(n * d * itemsize * (num_tiles + 1)
                           + n_pad * d * itemsize + n_pad * 128 * 4),
    )

    per_row = pl.pallas_call(
        kernel,
        out_shape=jax.ShapeDtypeStruct((n_pad, 128), jnp.float32),
        grid_spec=pltpu.PrefetchScalarGridSpec(
            num_scalar_prefetch=0,
            grid=(num_tiles,),
            in_specs=in_specs,
            out_specs=pl.BlockSpec((block_rows, 128), lambda i: (i, 0)),
        ),
        compiler_params=pltpu.CompilerParams(
            dimension_semantics=("parallel",),
            vmem_limit_bytes=vmem_limit,
        ),
        cost_estimate=cost,
    )(*inputs)

    # CrossEntropyLoss(reduction='sum') / (2 * batch_size); drop padded rows.
    return jnp.sum(per_row[:n, 0]) / n


def _reference_loss(zis, zjs, temperature, use_cosine_similarity):
    """Pure-JAX reference following the PyTorch module step by step."""
    b = zis.shape[0]
    n = 2 * b
    reps = jnp.concatenate([zjs, zis], axis=0)
    if use_cosine_similarity:
        x = reps / jnp.maximum(jnp.linalg.norm(reps, axis=-1, keepdims=True),
                               1e-8)
        sim = x @ x.T
    else:
        sim = reps @ reps.T
    l_pos = jnp.diagonal(sim, offset=b)
    r_pos = jnp.diagonal(sim, offset=-b)
    positives = jnp.concatenate([l_pos, r_pos]).reshape(n, 1)
    mask = ~(np.eye(n, dtype=bool)
             | np.eye(n, k=b, dtype=bool)
             | np.eye(n, k=-b, dtype=bool))
    rr, cc = np.nonzero(mask)
    negatives = sim[rr, cc].reshape(n, n - 2)
    logits = jnp.concatenate([positives, negatives], axis=1) / temperature
    m = jnp.max(logits, axis=1, keepdims=True)
    lse = m[:, 0] + jnp.log(jnp.sum(jnp.exp(logits - m), axis=1))
    return jnp.sum(lse - logits[:, 0]) / n


if __name__ == "__main__":
    key = jax.random.PRNGKey(0)
    k1, k2, k3, k4 = jax.random.split(key, 4)

    batch_size, hidden = 8, 32            # small shapes: batch=8, hidden=32
    temperature = 0.5

    zis = jax.random.normal(k1, (batch_size, hidden), dtype=jnp.float32)
    zjs = jax.random.normal(k2, (batch_size, hidden), dtype=jnp.float32)

    # Both similarity functions, fast-partner path, grid=(2,) row tiles.
    for use_cos in (True, False):
        loss = ntxent_loss(zis, zjs, temperature,
                           use_cosine_similarity=use_cos, block_rows=8)
        loss = jax.block_until_ready(loss)
        ref = _reference_loss(zis, zjs, temperature, use_cos)
        assert loss.shape == ()
        assert jnp.allclose(loss, ref, atol=1e-4, rtol=1e-4), (use_cos, loss, ref)

    # bf16 MXU operands (fast path on v6e/v7x) — looser tolerance.
    loss_bf16 = jax.block_until_ready(
        ntxent_loss(zis, zjs, temperature, use_cosine_similarity=True,
                    block_rows=8, matmul_dtype=jnp.bfloat16))
    ref = _reference_loss(zis, zjs, temperature, True)
    assert jnp.allclose(loss_bf16, ref, atol=3e-2, rtol=3e-2), (loss_bf16, ref)

    # Odd batch: exercises the padded last tile + fallback partner path.
    b2 = 6
    zis2 = jax.random.normal(k3, (b2, hidden), dtype=jnp.float32)
    zjs2 = jax.random.normal(k4, (b2, hidden), dtype=jnp.float32)
    loss2 = jax.block_until_ready(
        ntxent_loss(zis2, zjs2, temperature, use_cosine_similarity=True,
                    block_rows=8))
    ref2 = _reference_loss(zis2, zjs2, temperature, True)
    assert jnp.allclose(loss2, ref2, atol=1e-4, rtol=1e-4), (loss2, ref2)

    print("KERNEL_OK")
</pallas_src>

<mosaic_0001>
module attributes {stable_mosaic.version = 11 : i64} {
  func.func @_ntxent_kernel(%arg0: i32, %arg1: memref<8x32xf32, #tpu.memory_space<vmem>>, %arg2: memref<32x16xf32, #tpu.memory_space<vmem>>, %arg3: memref<8x32xf32, #tpu.memory_space<vmem>>, %arg4: memref<8x128xf32, #tpu.memory_space<vmem>>) attributes {dimension_semantics = [#tpu.dimension_semantics<parallel>], iteration_bounds = array<i64: 2>, scalar_prefetch = 0 : i64, scratch_operands = 0 : i64, tpu.core_type = #tpu.core_type<tc>, window_params = [{transform_indices = @transform_0, window_bounds = array<i64: 8, 32>}, {pipeline_mode = #tpu.pipeline_mode<synchronous>, transform_indices = @transform_1, window_bounds = array<i64: 32, 16>}, {transform_indices = @transform_2, window_bounds = array<i64: 8, 32>}, {transform_indices = @transform_3, window_bounds = array<i64: 8, 128>}]} {
    %c8_i32 = arith.constant 8 : i32
    %0 = arith.muli %arg0, %c8_i32 : i32
    %1 = tpu.assume_multiple %0, 8 : i32
    %c0 = arith.constant 0 : index
    %c0_0 = arith.constant 0 : index
    %2 = vector.load %arg1[%c0, %c0_0] : memref<8x32xf32, #tpu.memory_space<vmem>>, vector<8x32xf32>
    %c0_1 = arith.constant 0 : index
    %c0_2 = arith.constant 0 : index
    %3 = vector.load %arg2[%c0_1, %c0_2] : memref<32x16xf32, #tpu.memory_space<vmem>>, vector<32x16xf32>
    %cst = arith.constant dense<0.000000e+00> : vector<8x16xf32>
    %4 = tpu.matmul %2, %3, %cst {dimension_numbers = #tpu.dot_dimension_numbers<[1], [0], [0], [1], [0, 0, 1, 1], [], []>} : vector<8x32xf32>, vector<32x16xf32>, vector<8x16xf32> -> vector<8x16xf32>
    %cst_3 = arith.constant 2.000000e+00 : f32
    %5 = vector.broadcast %cst_3 : f32 to vector<8x16xf32>
    %6 = arith.mulf %4, %5 : vector<8x16xf32>
    %7 = tpu.iota {dimensions = array<i32: 1>} : vector<8x16xi32>
    %8 = tpu.iota {dimensions = array<i32: 0>} : vector<8x1xi32>
    %9 = vector.broadcast %1 : i32 to vector<8x1xi32>
    %10 = arith.addi %9, %8 : vector<8x1xi32>
    %11 = vector.broadcast %10 : vector<8x1xi32> to vector<8x16xi32>
    %12 = arith.cmpi eq, %7, %11 : vector<8x16xi32>
    %cst_4 = arith.constant -1.000000e+30 : f32
    %13 = vector.broadcast %cst_4 : f32 to vector<8x16xf32>
    %14 = arith.select %12, %13, %6 : vector<8x16xi1>, vector<8x16xf32>
    %c0_5 = arith.constant 0 : index
    %c0_6 = arith.constant 0 : index
    %15 = vector.load %arg3[%c0_5, %c0_6] : memref<8x32xf32, #tpu.memory_space<vmem>>, vector<8x32xf32>
    %16 = arith.mulf %2, %15 : vector<8x32xf32>
    %cst_7 = arith.constant dense<0.000000e+00> : vector<8xf32>
    %17 = vector.multi_reduction <add>, %16, %cst_7 [1] : vector<8x32xf32> to vector<8xf32>
    %18 = vector.shape_cast %17 : vector<8xf32> to vector<8x1xf32>
    %cst_8 = arith.constant 2.000000e+00 : f32
    %19 = vector.broadcast %cst_8 : f32 to vector<8x1xf32>
    %20 = arith.mulf %18, %19 : vector<8x1xf32>
    %cst_9 = arith.constant dense<0xFF800000> : vector<8xf32>
    %21 = vector.multi_reduction <maximumf>, %14, %cst_9 [1] : vector<8x16xf32> to vector<8xf32>
    %22 = vector.shape_cast %21 : vector<8xf32> to vector<8x1xf32>
    %23 = vector.broadcast %22 : vector<8x1xf32> to vector<8x16xf32>
    %24 = arith.subf %14, %23 : vector<8x16xf32>
    %25 = math.exp %24 : vector<8x16xf32>
    %cst_10 = arith.constant dense<0.000000e+00> : vector<8xf32>
    %26 = vector.multi_reduction <add>, %25, %cst_10 [1] : vector<8x16xf32> to vector<8xf32>
    %27 = vector.shape_cast %26 : vector<8xf32> to vector<8x1xf32>
    %28 = math.log %27 : vector<8x1xf32>
    %29 = arith.addf %22, %28 : vector<8x1xf32>
    %30 = arith.subf %29, %20 : vector<8x1xf32>
    %31 = vector.shape_cast %30 : vector<8x1xf32> to vector<8x1xf32>
    %32 = vector.broadcast %31 : vector<8x1xf32> to vector<8x128xf32>
    %c0_11 = arith.constant 0 : index
    %c0_12 = arith.constant 0 : index
    %33 = vector.load %arg4[%c0_11, %c0_12] : memref<8x128xf32, #tpu.memory_space<vmem>>, vector<8x128xf32>
    tpu.vector_store %arg4[%c0_11, %c0_12], %32 {strides = array<i32>} : memref<8x128xf32, #tpu.memory_space<vmem>>, vector<8x128xf32>,
    return
  }
  func.func @transform_0(%arg0: i32) -> (i32, i32) {
    %c0_i32 = arith.constant 0 : i32
    %c0_i32_0 = arith.constant 0 : i32
    return %arg0, %c0_i32 : i32, i32
  }
  func.func @transform_1(%arg0: i32) -> (i32, i32) {
    %c0_i32 = arith.constant 0 : i32
    %c0_i32_0 = arith.constant 0 : i32
    %c0_i32_1 = arith.constant 0 : i32
    return %c0_i32, %c0_i32_0 : i32, i32
  }
  func.func @transform_2(%arg0: i32) -> (i32, i32) {
    %c1_i32 = arith.constant 1 : i32
    %0 = arith.addi %arg0, %c1_i32 : i32
    %c2_i32 = arith.constant 2 : i32
    %c0_i32 = arith.constant 0 : i32
    %1 = arith.cmpi eq, %c2_i32, %c0_i32 : i32
    %c1_i32_0 = arith.constant 1 : i32
    %2 = arith.select %1, %c1_i32_0, %c2_i32 : i32
    %3 = arith.remsi %0, %2 : i32
    %c0_i32_1 = arith.constant 0 : i32
    %4 = arith.cmpi ne, %3, %c0_i32_1 : i32
    %c0_i32_2 = arith.constant 0 : i32
    %5 = arith.cmpi slt, %3, %c0_i32_2 : i32
    %c0_i32_3 = arith.constant 0 : i32
    %6 = arith.cmpi slt, %2, %c0_i32_3 : i32
    %7 = arith.xori %5, %6 : i1
    %8 = arith.andi %7, %4 : i1
    %9 = arith.addi %3, %2 : i32
    %10 = arith.select %8, %9, %3 : i32
    %c0_i32_4 = arith.constant 0 : i32
    %c0_i32_5 = arith.constant 0 : i32
    return %10, %c0_i32_4 : i32, i32
  }
  func.func @transform_3(%arg0: i32) -> (i32, i32) {
    %c0_i32 = arith.constant 0 : i32
    %c0_i32_0 = arith.constant 0 : i32
    return %arg0, %c0_i32 : i32, i32
  }
}

</mosaic_0001>

<bundles_post_ra>
// kernel: tpu_custom_call.1
= control target key start
LH: loop header
LB: loop body
LE: loop exit
PB: predicated region body
PF: predicated region fallthrough
CT: control target
= control target key end

     0   :  { %8 = vsyncpa [#allocation3], 0  ;;  %s679_s0 = inlined_call_operand.vmem [shape: f32[16,32], index: 0, kind: input, shape index: {}]   ;;  %s680_s1 = inlined_call_operand.vmem [shape: f32[32,16], index: 1, kind: input, shape index: {}]   ;;  %s681_s2 = inlined_call_operand.vmem [shape: f32[16,32], index: 2, kind: input, shape index: {}]   ;;  %s682_s3 = inlined_call_operand.hbm [shape: f32[16,128], index: 3, kind: output, shape index: {}]  }
   0x1   :  { %10 = vsyncpa [#allocation3 + $0x1], 0  ;;  %s570_s12 = smov 0   ;;  %s572_s13 = smov 0  }
   0x2   :  { %s574_s14 = smov 0   ;;  %s576_s15 = smov 0  }
   0x3 LB: > { %s591_s16 = sadd.s32 4294967295, %s548_s15   ;;  %s421_s17 = sadd.s32 4294967294, %s548_s15   ;;  %s548_s15 = sphi %s576_s15, %s688_s15   ;;  %s544_s14 = sphi %s574_s14, %s687_s14   ;;  %s540_s13 = sphi %s572_s13, %s686_s13   ;;  %s536_s12 = sphi %s570_s12, %s685_s12  }
   0x4   : > { %s595_s18 = sadd.s32 1, %s548_s15   ;;  %s122_s19 = sadd.s32 1, %s544_s14 }
   0x5   : > { %s119_s20 = ssub.s32 %s548_s15, %s595_s18  ;;  %p132_p0 = scmp.ne.s32.totalorder %s544_s14, %s540_s13 }
   0x6   : > { %p120_p1 = scmp.eq.s32.totalorder %s119_s20, 0  ;;  %p133_p2 = scmp.eq.s32.totalorder %s591_s16, 1 }
   0x7   : > { %p138_p3 = scmp.ne.s32.totalorder %s540_s13, %s536_s12  ;;  %p139_p4 = scmp.eq.s32.totalorder %s421_s17, 1 }
   0x8   : > { %s606_s21 = scalar_select %p120_p1, %s544_s14, %s122_s19  }
   0x9   : > { %p608_p5 = por %p133_p2, %p132_p0  ;;  %p612_p6 = por %p139_p4, %p138_p3 }
   0xa   : > { %p430_p7 = scmp.ge.s32.totalorder %s548_s15, 1  ;;  %p200_p8 = scmp.lt.s32.totalorder %s548_s15, 3 }
   0xc   : > { %p201_p9 = pnand %p430_p7, %p200_p8 }
   0xd   : > { %p240_p10 = scmp.lt.s32.totalorder (!%p201_p9), %s591_s16, 1  ;;  %s437_s10 = sshll.u32 (!%p201_p9), %s591_s16, 3 }
   0xe   : > { %204 = sbr.rel (%p201_p9) target bundleno = 417 (0x1a1), region = 32  ;;  %s244_s11 = sadd.s32 (!%p201_p9), 1, %s591_s16 }
   0xf   : > { %s246_s17 = ssub.s32 (!%p201_p9), 0, %s244_s11  ;;  %p245_p11 = scmp.lt.s32.totalorder (!%p201_p9), %s244_s11, 0 }
  0x10   : > { %s433_s19 = smin.u32 (!%p201_p9), %s246_s17, %s244_s11  ;;  %s345_s7 = scalar_lea.hbm (!%p201_p9), %s682_s3, %s437_s10 }
  0x11   : > { %s248_s20 = sand.u32 (!%p201_p9), 1, %s433_s19   ;;  %s349_s11 = sshll.u32 (!%p201_p9), %s345_s7, 4  ;;  %s350_s11 = int_to_ptr.hbm [resolvable:$true] %s349_s11 }
  0x12   : > { %s249_s24 = ssub.s32 (!%p201_p9), 0, %s248_s20  ;;  %s500_s19 = sshra.s32 (!%p201_p9), %s350_s11, 4  ;;  %s501_s19 = int_to_ptr.hbm [resolvable:$true] %s500_s19 }
  0x13   : > { %v279_v0 = vld [vmem:[%s680_s1 + $0x18] sm:$0xff]  ;;  %v278_v1 = vld [vmem:[%s680_s1 + $0x10] sm:$0xff]  ;;  %v277_v2 = vld [vmem:[%s680_s1 + $0x8] sm:$0xff]  ;;  %s241_s30 = scalar_select %p240_p10, %s591_s16, 1  ;;  %vm280_vm0 = vcmask 261120   ;;  %v305_v5 = vlaneseq  ;;  %v309_v7 = vstv %s437_s10  ;;  %vm319_vm2 = vcmask 130048  }
  0x14   : > { %296 = vmatpush.msra.mxu0 %v279_v0  ;;  %v276_v3 = vld [vmem:[%s680_s1] sm:$0xff]  ;;  %s690_s24 = smov (!%p245_p11, %s249_s24), %s248_s20  ;;  %s502_s16 = scalar_lea.hbm %s501_s19, 8 }
  0x15   : > { %s432_s6 = sshll.u32 %s241_s30, 3  ;;  %v308_v6 = vshrl.u32 %v305_v5, 7  ;;  %v306_v8 = vand.u32 127, %v305_v5  ;;  %p435_p12 = scmp.lt.s32.totalorder %s690_s24, 0 }
  0x16   : > { %297 = vmatpush.msra.mxu0 %v278_v1  ;;  %s243_s9 = scalar_lea.vmem %s679_s0, %s432_s6  ;;  %s255_s25 = sadd.s32 2, %s690_s24 }
  0x17   : > { %v275_v4 = vld [vmem:[%s243_s9] sm:$0xff]  ;;  %v310_v9 = vadd.s32 %v309_v7, %v308_v6  ;;  %s692_s25 = smov (!%p435_p12, %s255_s25), %s690_s24  ;;  %s237_s30 = sand.u32 1, %s540_s13  }
  0x18   : > { %298 = vmatpush.msra.mxu0 %v277_v2  ;;  %p257_p13 = scmp.lt.s32.totalorder %s692_s25, 1  ;;  %s431_s4 = sshll.u32 %s237_s30, 3 }
  0x19   : > { %vm311_vm1 = vcmp.eq.s32.totalorder %v306_v8, %v310_v9  ;;  %s239_s8 = scalar_lea.vmem [#allocation2], %s431_s4  ;;  %s335_s17 = scalar_lea.sflag [#allocation3], %s237_s30 }
  0x1a   : > { %299 = vmatpush.msra.mxu0 %v276_v3  ;;  %s694_s25 = smov (!%p257_p13, %s692_s25), 1  ;;  %s347_s9 = sshll.u32 %s239_s8, 4  ;;  %s348_s9 = int_to_ptr.vmem [resolvable:$true] %s347_s9 }
  0x1b   : > { %438 = vmatmul.msk.f32.vlgmr.msra.gmra.mxu0 %vm280_vm0, %v275_v4  ;;  %s436_s26 = sshll.u32 %s694_s25, 3  ;;  %p503_p0 = scmp.ne.s32.totalorder %s501_s19, %s502_s16 }
  0x1c   : > { %s260_s29 = scalar_lea.vmem %s681_s2, %s436_s26  ;;  %s506_s24 = scalar_lea.hbm %s682_s3, 16 }
  0x1d   : > { %v313_v14 = vld [vmem:[%s260_s29] sm:$0xff]  ;;  %p504_p1 = pnand %p503_p0, %p608_p5  ;;  %p507_p3 = scmp.lt.s32.totalorder %s501_s19, %s682_s3 }
  0x1e   : > { %v314_v15 = vmul.f32 %v313_v14, %v275_v4  ;;  %p508_p4 = scmp.lt.s32.totalorder %s506_s24, %s502_s16 }
  0x1f   : > { %p505_p2 = pneg %p504_p1 }
  0x20   : > { %v315_v16 = vsel %vm280_vm0, %v314_v15, 0.0  ;;  %p509_p7 = por %p508_p4, %p507_p3 }
  0x21   : > { %316 = vadd.xlane.f32.xlu1 %v315_v16 }
  0x22   : > { %p510_p8 = pnand %p509_p7, %p505_p2 }
  0x94   : > { %v317_v23 = vpop.xlane.xlu1 %316 }
  0x95   : > { %v318_v26 = vmul.f32 2.0, %v317_v23 }
  0x98   : > { %v301_v10 = vpop.f32.mrf.mxu0 }
  0x99   : > { %v304_v11 = vmul.f32 2.0, %v301_v10 }
  0x9b   : > { %v312_v12 = vsel %vm311_vm1, -1e+30, %v304_v11 }
  0x9c   : > { %v320_v13 = vsel %vm319_vm2, %v312_v12, -inf }
  0x9d   : > { %321 = vmax.xlane.f32.xlu0 %v320_v13 }
 0x110   : > { %v322_v17 = vpop.xlane.xlu0 %321 }
 0x111   : > { %v323_v18 = vsub.f32 %v312_v12, %v322_v17 }
 0x113   : > { %v324_v19 = vmul.f32 1.442695, %v323_v18 }
 0x115   : > { %482 = vpow2.f32 %v324_v19 }
 0x11b   : > { %v483_v20 = vpop.eup %482 }
 0x11c   : > { %v326_v21 = vsel %vm319_vm2, %v483_v20, 0.0 }
 0x11d   : > { %327 = vadd.xlane.f32.xlu0 %v326_v21 }
 0x190   : > { %v328_v22 = vpop.xlane.xlu0 %327 }
 0x191   : > { %484 = vlog2.f32 %v328_v22 }
 0x197   : > { %v485_v24 = vpop.eup %484 }
 0x198   : > { %v330_v25 = vmul.f32 0.6931472, %v485_v24 }
 0x19a   : > { %v331_v27 = vadd.f32 %v330_v25, %v322_v17 }
 0x19c   : > { %v332_v28 = vsub.f32 %v331_v27, %v318_v26 }
 0x19e   : > { %333 = vst [vmem:[%s239_s8] sm:$0xff] %v332_v28 }
 0x19f   : > { %513 = shalt.err (!%p510_p8)
}
 0x1a0   : > { %443 = dma.vmem_to_hbm [thread:$0]  (%p608_p5), %s348_s9, 128, %s350_s11, %s335_s17  }
 0x1a1 PF: > { %p449_p9 = scmp.ge.s32.totalorder %s548_s15, 2  ;;  %s361_s27 = sand.u32 1, %s536_s12  }
 0x1a2   : > { %s362_s28 = scalar_lea.sflag [#allocation3], %s361_s27 }
 0x1a3   : > { %p446_p10 = pnand %p449_p9, %p612_p6 }
 0x1a5   : > { %p447_p11 = pneg %p446_p10 }
 0x1a7   : > { %531 = dma.done.wait (%p447_p11), %s362_s28, 128  }
 0x1a8   : > { %533 = vsyncadd (%p447_p11), %s362_s28, 4294967168  ;;  %p13_p12 = scmp.ge.s32.totalorder %s595_s18, 4   ;;  %s685_s12 = smov %s540_s13 }
 0x1a9   : > { %s686_s13 = smov %s544_s14  ;;  %s687_s14 = smov %s606_s21 }
 0x1aa   : > { %s688_s15 = smov %s595_s18  ;;  %15 = sbr.rel (!%p13_p12) target bundleno = 3 (0x3), region = 70 }
 0x1af   :  { %368 = vsyncpa [#allocation3], 1 }
 0x1b0   :  { %370 = vsyncpa [#allocation3 + $0x1], 1 }

</bundles_post_ra>
